<compile_context>
chip_gen: v7x
topology: tpu7x:2x2x1
jax: 0.10.0
libtpu: 0.0.40
codegen_flags: <defaults>
</compile_context>

<pallas_src>
import functools

import jax
import jax.numpy as jnp
from jax.experimental import pallas as pl
from jax.experimental.pallas import tpu as pltpu


def _round_up(x, m):
    return ((x + m - 1) // m) * m


def _cconv1d_k1_kernel(x_ref, w_ref, b_ref, o_ref):
    """kernel_size == 1: one MXU matmul per (batch, time-tile) step."""
    acc = jnp.dot(w_ref[...], x_ref[...], preferred_element_type=jnp.float32)
    o_ref[...] = (acc + b_ref[...]).astype(o_ref.dtype)


def _cconv1d_im2col_kernel(x_ref, xh_ref, w_ref, b_ref, o_ref, *, k_taps,
                           dilation, t_blk):
    """kernel_size > 1: im2col fold of the K taps into one MXU matmul.

    x_ref  : (C_in, t_blk)    current time tile
    xh_ref : (C_in, h_blk)    halo tile (columns immediately after the tile)
    w_ref  : (C_out, K*C_in)  folded block weight (tap-major, channel-minor)
    b_ref  : (C_out, 1)       folded bias, f32
    o_ref  : (C_out, t_blk)   output tile
    """
    taps = []
    for k in range(k_taps):                       # K static -> unrolled
        off = k * dilation
        if off == 0:
            taps.append(x_ref[...])
        else:
            parts = []
            if off < t_blk:
                parts.append(x_ref[:, off:])      # ref slice, not value slice
            parts.append(xh_ref[:, :off])
            taps.append(parts[0] if len(parts) == 1
                        else jnp.concatenate(parts, axis=1))
    x_col = jnp.concatenate(taps, axis=0)         # (K*C_in, t_blk)
    acc = jnp.dot(w_ref[...], x_col, preferred_element_type=jnp.float32)
    o_ref[...] = (acc + b_ref[...]).astype(o_ref.dtype)


def complex_conv1d(x, w_r, b_r, w_i, b_i, *, stride=1, padding=0, dilation=1,
                   groups=1, causal=True, complex_dim=1, t_block=512,
                   compute_dtype=jnp.bfloat16):
    """Pallas equivalent of ComplexConv1d.forward.

    x        : (B, C_in, T), real||imag halves along dim 1
    w_r, w_i : (C_out//2, C_in//2, K)  (PyTorch Conv1d weight layout)
    b_r, b_i : (C_out//2,)
    """
    assert complex_dim == 1  # TODO(synk): complex_dim == 0 branch not implemented
    assert stride == 1 and groups == 1  # TODO(synk): stride > 1 / groups > 1 not implemented

    B, C_in, T = x.shape
    co_h, ci_h, K = w_r.shape
    assert w_i.shape == (co_h, ci_h, K) and C_in == 2 * ci_h
    C_out = 2 * co_h
    out_dtype = x.dtype

    # --- time padding, exactly as F.pad in the torch forward ----------------
    if causal and padding:
        pad_l, pad_r = padding, 0
    else:
        pad_l = pad_r = padding
    halo = dilation * (K - 1)
    T_out = T + pad_l + pad_r - halo
    assert T_out >= 1

    # --- lane-dense time tiling ----------------------------------------------
    t_blk = max(128, _round_up(min(t_block, T_out), 128))
    h_blk = _round_up(halo, 128) if halo > 0 else 0
    if h_blk:
        t_blk = _round_up(t_blk, h_blk)      # halo-view block stride divides tile
    n_t = pl.cdiv(T_out, t_blk)
    T_out_pad = n_t * t_blk                  # multiple of 128 -> unmasked stores
    T_alloc = T_out_pad + h_blk              # room for the last tile's halo

    # One pad covers causal/non-causal padding + tiling/halo padding.
    # TODO(synk): the jnp.pad still materializes a padded copy of x in HBM;
    # fusing it into the pallas_call input would remove that round trip.
    x_pad = jnp.pad(x, ((0, 0), (0, 0), (pad_l, T_alloc - T - pad_l)))
    x_pad = x_pad.astype(compute_dtype)

    # --- fold complex arithmetic + im2col the taps into one weight ----------
    #   [out_r]   [ W_r  -W_i ] [real]   [b_r - b_i]
    #   [out_i] = [ W_i   W_r ] [imag] + [b_i + b_r]
    w_blk = jnp.concatenate(
        [jnp.concatenate([w_r, -w_i], axis=1),
         jnp.concatenate([w_i, w_r], axis=1)], axis=0)           # (C_out, C_in, K)
    # columns ordered tap-major / channel-minor to match x_col in the kernel
    w2d = jnp.transpose(w_blk, (0, 2, 1)).reshape(C_out, K * C_in)
    w2d = w2d.astype(compute_dtype)
    b_blk = jnp.concatenate([b_r - b_i, b_i + b_r], axis=0)
    b_blk = b_blk.reshape(C_out, 1).astype(jnp.float32)

    # --- grid / specs ---------------------------------------------------------
    x_spec = pl.BlockSpec((None, C_in, t_blk), lambda b, t: (b, 0, t))
    w_spec = pl.BlockSpec((C_out, K * C_in), lambda b, t: (0, 0))
    b_spec = pl.BlockSpec((C_out, 1), lambda b, t: (0, 0))
    out_spec = pl.BlockSpec((None, C_out, t_blk), lambda b, t: (b, 0, t))

    if h_blk:
        r = t_blk // h_blk                   # halo block starts at (t+1)*t_blk
        xh_spec = pl.BlockSpec((None, C_in, h_blk),
                               lambda b, t, r=r: (b, 0, (t + 1) * r))
        in_specs = [x_spec, xh_spec, w_spec, b_spec]
        args = (x_pad, x_pad, w2d, b_blk)
        kernel = functools.partial(_cconv1d_im2col_kernel, k_taps=K,
                                   dilation=dilation, t_blk=t_blk)
    else:
        in_specs = [x_spec, w_spec, b_spec]
        args = (x_pad, w2d, b_blk)
        kernel = _cconv1d_k1_kernel

    grid_spec = pltpu.PrefetchScalarGridSpec(
        num_scalar_prefetch=0,
        grid=(B, n_t),
        in_specs=in_specs,
        out_specs=out_spec,
    )

    out = pl.pallas_call(
        kernel,
        out_shape=jax.ShapeDtypeStruct((B, C_out, T_out_pad), out_dtype),
        grid_spec=grid_spec,
        compiler_params=pltpu.CompilerParams(
            dimension_semantics=("parallel", "parallel"),
        ),
    )(*args)

    return out if T_out_pad == T_out else out[..., :T_out]


# ------------------------------ pure-JAX reference ---------------------------
def _conv1d_ref(x, w, b, dilation=1):
    out = jax.lax.conv_general_dilated(
        x, w, window_strides=(1,), padding="VALID", rhs_dilation=(dilation,),
        dimension_numbers=("NCH", "OIH", "NCH"))
    return out + b[None, :, None]


def complex_conv1d_ref(x, w_r, b_r, w_i, b_i, *, padding=0, dilation=1,
                       causal=True):
    if causal and padding:
        xp = jnp.pad(x, ((0, 0), (0, 0), (padding, 0)))
    else:
        xp = jnp.pad(x, ((0, 0), (0, 0), (padding, padding)))
    real, imag = jnp.split(xp, 2, axis=1)
    rr = _conv1d_ref(real, w_r, b_r, dilation)
    ii = _conv1d_ref(imag, w_i, b_i, dilation)
    ri = _conv1d_ref(real, w_i, b_i, dilation)
    ir = _conv1d_ref(imag, w_r, b_r, dilation)
    return jnp.concatenate([rr - ii, ri + ir], axis=1)


if __name__ == "__main__":
    key = jax.random.PRNGKey(0)
    B, C_in, C_out, T = 2, 8, 8, 16

    def make_params(k, K):
        k1, k2, k3, k4 = jax.random.split(k, 4)
        ci_h, co_h = C_in // 2, C_out // 2
        scale = 1.0 / float(ci_h * K) ** 0.5
        w_r = scale * jax.random.normal(k1, (co_h, ci_h, K), dtype=jnp.float32)
        w_i = scale * jax.random.normal(k2, (co_h, ci_h, K), dtype=jnp.float32)
        b_r = scale * jax.random.normal(k3, (co_h,), dtype=jnp.float32)
        b_i = scale * jax.random.normal(k4, (co_h,), dtype=jnp.float32)
        return w_r, b_r, w_i, b_i

    kx, kp1, kp2, kp3 = jax.random.split(key, 4)
    x = jax.random.normal(kx, (B, C_in, T), dtype=jnp.float32)

    # Case 1: module defaults (kernel_size=1, padding=0, causal=True), f32 compute.
    w_r, b_r, w_i, b_i = make_params(kp1, 1)
    out1 = jax.block_until_ready(
        complex_conv1d(x, w_r, b_r, w_i, b_i, padding=0, causal=True,
                       compute_dtype=jnp.float32))
    ref1 = complex_conv1d_ref(x, w_r, b_r, w_i, b_i, padding=0, causal=True)
    assert out1.shape == ref1.shape and out1.dtype == x.dtype
    assert jnp.allclose(out1, ref1, atol=1e-2, rtol=1e-2)

    # Case 2: causal, kernel_size=3, padding=2 (same T out), bf16 compute.
    w_r, b_r, w_i, b_i = make_params(kp2, 3)
    out2 = jax.block_until_ready(
        complex_conv1d(x, w_r, b_r, w_i, b_i, padding=2, causal=True))
    ref2 = complex_conv1d_ref(x, w_r, b_r, w_i, b_i, padding=2, causal=True)
    assert out2.shape == ref2.shape == (B, C_out, T)
    assert jnp.allclose(out2, ref2, atol=5e-2, rtol=5e-2)

    # Case 3: non-causal, kernel_size=3, dilation=2, padding=2, bf16 compute.
    w_r, b_r, w_i, b_i = make_params(kp3, 3)
    out3 = jax.block_until_ready(
        complex_conv1d(x, w_r, b_r, w_i, b_i, padding=2, dilation=2,
                       causal=False))
    ref3 = complex_conv1d_ref(x, w_r, b_r, w_i, b_i, padding=2, dilation=2,
                              causal=False)
    assert out3.shape == ref3.shape == (B, C_out, T)
    assert jnp.allclose(out3, ref3, atol=5e-2, rtol=5e-2)

    print("KERNEL_OK")
</pallas_src>

<mosaic_0001>
module attributes {stable_mosaic.version = 11 : i64} {
  func.func @_cconv1d_k1_kernel(%arg0: i32, %arg1: i32, %arg2: memref<1x8x128xf32, #tpu.memory_space<vmem>>, %arg3: memref<8x8xf32, #tpu.memory_space<vmem>>, %arg4: memref<8x1xf32, #tpu.memory_space<vmem>>, %arg5: memref<1x8x128xf32, #tpu.memory_space<vmem>>) attributes {dimension_semantics = [#tpu.dimension_semantics<parallel>, #tpu.dimension_semantics<parallel>], iteration_bounds = array<i64: 2, 1>, scalar_prefetch = 0 : i64, scratch_operands = 0 : i64, tpu.core_type = #tpu.core_type<tc>, window_params = [{transform_indices = @transform_0, window_bounds = array<i64: 1, 8, 128>}, {pipeline_mode = #tpu.pipeline_mode<synchronous>, transform_indices = @transform_1, window_bounds = array<i64: 8, 8>}, {pipeline_mode = #tpu.pipeline_mode<synchronous>, transform_indices = @transform_2, window_bounds = array<i64: 8, 1>}, {transform_indices = @transform_3, window_bounds = array<i64: 1, 8, 128>}]} {
    %c0 = arith.constant 0 : index
    %c0_0 = arith.constant 0 : index
    %0 = vector.load %arg3[%c0, %c0_0] : memref<8x8xf32, #tpu.memory_space<vmem>>, vector<8x8xf32>
    %c0_1 = arith.constant 0 : index
    %c0_2 = arith.constant 0 : index
    %c0_3 = arith.constant 0 : index
    %1 = vector.load %arg2[%c0_1, %c0_2, %c0_3] : memref<1x8x128xf32, #tpu.memory_space<vmem>>, vector<1x8x128xf32>
    %2 = vector.shape_cast %1 : vector<1x8x128xf32> to vector<8x128xf32>
    %cst = arith.constant dense<0.000000e+00> : vector<8x128xf32>
    %3 = tpu.matmul %0, %2, %cst {dimension_numbers = #tpu.dot_dimension_numbers<[1], [0], [0], [1], [0, 0, 1, 1], [], []>} : vector<8x8xf32>, vector<8x128xf32>, vector<8x128xf32> -> vector<8x128xf32>
    %c0_4 = arith.constant 0 : index
    %c0_5 = arith.constant 0 : index
    %4 = vector.load %arg4[%c0_4, %c0_5] : memref<8x1xf32, #tpu.memory_space<vmem>>, vector<8x1xf32>
    %5 = vector.broadcast %4 : vector<8x1xf32> to vector<8x128xf32>
    %6 = arith.addf %3, %5 : vector<8x128xf32>
    %c0_6 = arith.constant 0 : index
    %c0_7 = arith.constant 0 : index
    %c0_8 = arith.constant 0 : index
    %7 = vector.load %arg5[%c0_6, %c0_7, %c0_8] : memref<1x8x128xf32, #tpu.memory_space<vmem>>, vector<1x8x128xf32>
    %8 = vector.shape_cast %7 : vector<1x8x128xf32> to vector<8x128xf32>
    %9 = vector.shape_cast %6 : vector<8x128xf32> to vector<1x8x128xf32>
    tpu.vector_store %arg5[%c0_6, %c0_7, %c0_8], %9 {strides = array<i32>} : memref<1x8x128xf32, #tpu.memory_space<vmem>>, vector<1x8x128xf32>,
    return
  }
  func.func @transform_0(%arg0: i32, %arg1: i32) -> (i32, i32, i32) {
    %c0_i32 = arith.constant 0 : i32
    %c0_i32_0 = arith.constant 0 : i32
    return %arg0, %c0_i32, %arg1 : i32, i32, i32
  }
  func.func @transform_1(%arg0: i32, %arg1: i32) -> (i32, i32) {
    %c0_i32 = arith.constant 0 : i32
    %c0_i32_0 = arith.constant 0 : i32
    %c0_i32_1 = arith.constant 0 : i32
    return %c0_i32, %c0_i32_0 : i32, i32
  }
  func.func @transform_2(%arg0: i32, %arg1: i32) -> (i32, i32) {
    %c0_i32 = arith.constant 0 : i32
    %c0_i32_0 = arith.constant 0 : i32
    %c0_i32_1 = arith.constant 0 : i32
    return %c0_i32, %c0_i32_0 : i32, i32
  }
  func.func @transform_3(%arg0: i32, %arg1: i32) -> (i32, i32, i32) {
    %c0_i32 = arith.constant 0 : i32
    %c0_i32_0 = arith.constant 0 : i32
    return %arg0, %c0_i32, %arg1 : i32, i32, i32
  }
}

</mosaic_0001>

<bundles_post_ra>
// kernel: tpu_custom_call.1
= control target key start
LH: loop header
LB: loop body
LE: loop exit
PB: predicated region body
PF: predicated region fallthrough
CT: control target
= control target key end

     0   :  { %8 = vsyncpa [#allocation3], 0  ;;  %s785_s0 = inlined_call_operand.hbm [shape: f32[2,8,128], index: 0, kind: input, shape index: {}]   ;;  %s786_s1 = inlined_call_operand.vmem [shape: f32[8,8], index: 1, kind: input, shape index: {}]   ;;  %s787_s2 = inlined_call_operand.vmem [shape: f32[8,1], index: 2, kind: input, shape index: {}]   ;;  %s788_s3 = inlined_call_operand.hbm [shape: f32[2,8,128], index: 3, kind: output, shape index: {}]  }
   0x1   :  { %10 = vsyncpa [#allocation3 + $0x1], 0 }
   0x2   :  { %11 = vsyncpa [#allocation4], 0 }
   0x3   :  { %13 = vsyncpa [#allocation4 + $0x1], 0  ;;  %s607_s12 = smov 0   ;;  %s609_s13 = smov 0  }
   0x4   :  { %s611_s14 = smov 0   ;;  %s613_s15 = smov 0  }
   0x5   :  { %s615_s16 = smov 0   ;;  %s617_s17 = smov 0  }
   0x6 LB: > { %s381_s18 = sadd.s32 4294967295, %s580_s17   ;;  %s382_s19 = sadd.s32 4294967294, %s580_s17   ;;  %s580_s17 = sphi %s617_s17, %s19_s17   ;;  %s576_s16 = sphi %s615_s16, %s804_s16   ;;  %s572_s15 = sphi %s613_s15, %s803_s15   ;;  %s568_s14 = sphi %s611_s14, %s802_s14   ;;  %s564_s13 = sphi %s609_s13, %s801_s13   ;;  %s560_s12 = sphi %s607_s12, %s800_s12  }
   0x7   : > { %s31_s20 = sadd.s32 1, %s576_s16  ;;  %s40_s21 = sadd.s32 1, %s568_s14 }
   0x8   : > { %p33_p0 = scmp.ge.s32.totalorder %s31_s20, 2  ;;  %p47_p1 = scmp.ne.s32.totalorder %s568_s14, %s564_s13 }
   0x9   : > { %p48_p2 = scmp.eq.s32.totalorder %s580_s17, 0  ;;  %p53_p3 = scmp.ne.s32.totalorder %s564_s13, %s560_s12 }
   0xa   : > { %s806_s20 = smov (%p33_p0, %s31_s20), 0  ;;  %p54_p5 = scmp.eq.s32.totalorder %s381_s18, 0 }
   0xb   : > { %p648_p4 = por %p48_p2, %p47_p1  ;;  %s35_s23 = ssub.s32 %s576_s16, %s806_s20 }
   0xc   : > { %p121_p6 = scmp.eq.s32.totalorder %s381_s18, 1  ;;  %p38_p7 = scmp.eq.s32.totalorder %s35_s23, 0 }
   0xd   : > { %p654_p8 = por %p54_p5, %p53_p3  ;;  %p127_p10 = scmp.eq.s32.totalorder %s382_s19, 1 }
   0xe   : > { %p658_p9 = por %p121_p6, %p47_p1  ;;  %p414_p13 = scmp.lt.s32.totalorder %s580_s17, 2 }
   0xf   : > { %s663_s26 = scalar_select %p38_p7, %s568_s14, %s40_s21  }
  0x10   : > { %s792_s25 = scalar_select %p658_p9, 1, 0 }
  0x11   : > { %p665_p11 = por %p127_p10, %p53_p3  ;;  %s153_s28 = sand.u32 1, %s568_s14  }
  0x12   : > { %s385_s29 = sshll.u32 %s153_s28, 3  ;;  %s386_s30 = sshll.u32 %s576_s16, 7 }
  0x13   : > { %s793_s27 = scalar_select %p665_p11, 1, 0 }
  0x14   : > { %s676_s6 = scalar_lea.hbm %s785_s0, %s386_s30  ;;  %s157_s7 = scalar_lea.vmem [#allocation2], %s385_s29 }
  0x15   : > { %s165_s8 = sshll.u32 %s157_s7, 4  ;;  %p682_p0 = pnand %p414_p13, %p648_p4  ;;  %s678_s8 = int_to_ptr.vmem [resolvable:$true] %s165_s8 }
  0x16   : > { %s154_s10 = scalar_lea.sflag [#allocation3], %s153_s28  ;;  %s468_s11 = scalar_lea.hbm %s676_s6, 128 }
  0x17   : > { %p469_p3 = scmp.ne.s32.totalorder %s676_s6, %s468_s11  ;;  %p470_p5 = pneg %p682_p0 }
  0x18   : > { %s473_s21 = scalar_lea.hbm %s785_s0, 256  ;;  %p474_p4 = scmp.lt.u32.totalorder %s676_s6, %s785_s0 }
  0x19   : > { %p471_p6 = pnand %p470_p5, %p469_p3  ;;  %p475_p10 = scmp.lt.u32.totalorder %s473_s21, %s468_s11 }
  0x1a   : > { %p477_p12 = scmp.lt.u32.totalorder %s468_s11, %s676_s6 }
  0x1b   : > { %p472_p7 = pneg %p471_p6  ;;  %p476_p13 = por %p475_p10, %p474_p4 }
  0x1d   : > { %p478_p1 = por %p477_p12, %p476_p13 }
  0x1f   : > { %p479_p2 = pnand %p478_p1, %p472_p7 }
  0x21   : > { %482 = shalt.err (!%p479_p2)
}
  0x22   : > { %s483_s28 = scalar_lea.vmem %s678_s8, 128  ;;  %s582_s29 = smov [#allocation2]  }
  0x23   : > { %p484_p3 = scmp.ne.s32.totalorder %s678_s8, %s483_s28  ;;  %s488_s30 = sshll.u32 %s582_s29, 4  ;;  %s489_s30 = int_to_ptr.vmem [resolvable:$false] %s488_s30 }
  0x24   : > { %s490_s4 = scalar_lea.vmem %s489_s30, 256  ;;  %p491_p9 = scmp.lt.s32.totalorder %s678_s8, %s489_s30 }
  0x25   : > { %p486_p6 = pnand %p484_p3, %p470_p5  ;;  %p492_p4 = scmp.lt.s32.totalorder %s490_s4, %s483_s28 }
  0x27   : > { %p487_p11 = pneg %p486_p6  ;;  %p493_p10 = por %p492_p4, %p491_p9 }
  0x29   : > { %p494_p12 = pnand %p493_p10, %p487_p11 }
  0x2b   : > { %497 = shalt.err (!%p494_p12)
}
  0x2c   : > { %409 = dma.hbm_to_vmem [thread:$0]  (!%p682_p0), %s676_s6, 128, %s678_s8, %s154_s10  }
  0x2d   : > { %p795_p1 = scmp.lt.s32.totalorder %s580_s17, 3  ;;  %p796_p2 = scmp.ge.s32.totalorder %s580_s17, 1 }
  0x2f   : > { %p171_p5 = pnand %p796_p2, %p795_p1 }
  0x30   : > { %s718_s5 = sand.u32 (!%p171_p5), 1, %s564_s13  }
  0x31   : > { %174 = sbr.rel (%p171_p5) target bundleno = 288 (0x120), region = 32  ;;  %s388_s7 = sshll.u32 (!%p171_p5), %s718_s5, 3 }
  0x32   : > { %s177_s11 = scalar_lea.sflag (!%p171_p5), [#allocation3], %s718_s5  ;;  %s180_s18 = scalar_lea.vmem (!%p171_p5), [#allocation2], %s388_s7 }
  0x38   : > { %551 = dma.done.wait (%p654_p8), %s177_s11, 128  }
  0x39   : > { %553 = vsyncadd (%p654_p8), %s177_s11, 4294967168  ;;  %v583_v0 = vmov 0.0   ;;  %vm584_vm0 = vmmov 0   ;;  %v585_v1 = vmov 0   ;;  %vm211_vm1 = vcmask 64512   ;;  %v204_v2 = vld [vmem:[%s180_s18] sm:$0xff] }
  0x3a   : > { %397 = vmatprep.subr.mxu0 %v583_v0  ;;  %399 = vmatprep.mubr.msk.f32.mxu0 %vm584_vm0, %v583_v0  ;;  %v203_v3 = vld [vmem:[%s786_s1] sm:$0xff]  ;;  %s392_s24 = sshll.u32 %s572_s15, 7  ;;  %s202_s19 = scalar_lea.vmem [#allocation5], %s388_s7 }
  0x3b   : > { %467 = vset.pattern.permute.xlu0 %v585_v1  ;;  %v205_v4 = vld [vmem:[%s787_s2] sm:$0xff]  ;;  %398 = vmatpush3.msra.mxu0 %v204_v2  ;;  %s301_s21 = sshll.u32 %s202_s19, 4  ;;  %s736_s28 = scalar_lea.hbm %s788_s3, %s392_s24  ;;  %s738_s21 = int_to_ptr.vmem [resolvable:$true] %s301_s21 }
  0x3c   : > { %208 = vperm.xlu0 %467, %v205_v4   ;;  %400 = vmatmul.mubr.msk.f32.vlgmr.msra.gmra.mrb[0].mxu0 %vm211_vm1, %v203_v3  ;;  %s287_s29 = scalar_lea.sflag [#allocation4], %s718_s5  ;;  %s498_s30 = scalar_lea.vmem %s738_s21, 128 }
  0x3d   : > { %p499_p8 = scmp.ne.s32.totalorder %s738_s21, %s498_s30  ;;  %p797_p9 = scmp.ne.s32.totalorder %s792_s25, 0 }
  0x3e   : > { %s586_s15 = smov [#allocation5]  }
  0x3f   : > { %p500_p11 = pnand %p499_p8, %p797_p9  ;;  %s502_s4 = sshll.u32 %s586_s15, 4  ;;  %s503_s4 = int_to_ptr.vmem [resolvable:$false] %s502_s4 }
  0x40   : > { %s504_s7 = scalar_lea.vmem %s503_s4, 256  ;;  %p505_p7 = scmp.lt.s32.totalorder %s738_s21, %s503_s4 }
  0x41   : > { %p501_p0 = pneg %p500_p11  ;;  %p506_p13 = scmp.lt.s32.totalorder %s504_s7, %s498_s30 }
  0x43   : > { %p507_p3 = por %p506_p13, %p505_p7 }
  0x45   : > { %p508_p6 = pnand %p507_p3, %p501_p0 }
  0xbb   : > { %v209_v5 = vpop.permute.xlu0 %208 }
 0x10f   : > { %v281_v6 = vpop.f32.mrb[0].mxu0 }
 0x110   : > { %v282_v7 = vadd.f32 %v281_v6, %v209_v5  ;;  %v401_v8 = vpop.f32.mrb[1].mxu0 }
 0x112   : > { %285 = vst [vmem:[%s202_s19] sm:$0xff] %v282_v7 }
 0x113   : > { %511 = shalt.err (!%p508_p6)
}
 0x114   : > { %s512_s5 = scalar_lea.hbm %s736_s28, 128  ;;  %s516_s6 = scalar_lea.hbm %s788_s3, 256 }
 0x115   : > { %p513_p4 = scmp.ne.s32.totalorder %s736_s28, %s512_s5  ;;  %p517_p1 = scmp.lt.u32.totalorder %s736_s28, %s788_s3 }
 0x116   : > { %p518_p2 = scmp.lt.u32.totalorder %s516_s6, %s512_s5  ;;  %p520_p8 = scmp.lt.u32.totalorder %s512_s5, %s736_s28 }
 0x117   : > { %p514_p10 = pnand %p513_p4, %p797_p9 }
 0x118   : > { %p519_p5 = por %p518_p2, %p517_p1 }
 0x119   : > { %p515_p12 = pneg %p514_p10 }
 0x11a   : > { %p521_p11 = por %p520_p8, %p519_p5 }
 0x11c   : > { %p522_p0 = pnand %p521_p11, %p515_p12 }
 0x11e   : > { %525 = shalt.err (!%p522_p0)
}
 0x11f   : > { %404 = dma.vmem_to_hbm [thread:$0]  (%p797_p9), %s738_s21, 128, %s736_s28, %s287_s29  }
 0x120 PF: > { %s313_s10 = sand.u32 1, %s560_s12   ;;  %p798_p7 = scmp.ne.s32.totalorder %s793_s27, 0 }
 0x121   : > { %p799_p13 = scmp.ge.s32.totalorder %s580_s17, 2  ;;  %s314_s24 = scalar_lea.sflag [#allocation4], %s313_s10 }
 0x123   : > { %p411_p3 = pnand %p799_p13, %p798_p7 }
 0x125   : > { %555 = dma.done.wait (!%p411_p3), %s314_s24, 128  }
 0x126   : > { %557 = vsyncadd (!%p411_p3), %s314_s24, 4294967168  ;;  %s19_s17 = sadd.s32 1, %s580_s17   ;;  %s800_s12 = smov %s564_s13 }
 0x127   : > { %p16_p6 = scmp.ge.s32.totalorder %s19_s17, 4   ;;  %s801_s13 = smov %s568_s14 }
 0x128   : > { %s802_s14 = smov %s663_s26  ;;  %s803_s15 = smov %s576_s16 }
 0x129   : > { %s804_s16 = smov %s806_s20  ;;  %18 = sbr.rel (!%p16_p6) target bundleno = 6 (0x6), region = 77 }
 0x130   :  { %319 = vsyncpa [#allocation3], 1 }
 0x131   :  { %321 = vsyncpa [#allocation3 + $0x1], 1 }
 0x132   :  { %322 = vsyncpa [#allocation4], 1 }
 0x133   :  { %324 = vsyncpa [#allocation4 + $0x1], 1 }

</bundles_post_ra>
